<compile_context>
chip_gen: v7x
topology: tpu7x:2x2x1
jax: 0.10.0
libtpu: 0.0.40
codegen_flags: <defaults>
</compile_context>

<pallas_src>
import functools

import jax
import jax.numpy as jnp
from jax.experimental import pallas as pl
from jax.experimental.pallas import tpu as pltpu


def _adapter_kernel(x_ref, w_ref, b_ref, o_ref):
    # x_ref: (TB, Cin, TN)  channels-major pixel tile (pixels on lanes)
    # w_ref: (Cout, Cin)    full weight, resident in VMEM (constant index_map)
    # b_ref: (Cout, 1)      full bias, resident
    # o_ref: (TB, Cout, TN)
    w = w_ref[...]
    b = b_ref[...]
    cin = x_ref.shape[1]        # static (3), unrolled below
    tb = x_ref.shape[0]         # static batch-tile size

    def compute_row(i):
        x = x_ref[i]            # (Cin, TN)
        # Unrolled K=Cin contraction as VPU broadcast-FMAs:
        #   y[c, p] = sum_k w[c, k] * x[k, p] + b[c]
        y = b + w[:, 0:1] * x[0:1, :]
        for k in range(1, cin):
            y = y + w[:, k:k + 1] * x[k:k + 1, :]
        # LeakyReLU(negative_slope=0.2), written straight into the output block
        # so live temporaries stay ~(Cout, TN) regardless of TB.
        o_ref[i] = jnp.where(y > 0, y, 0.2 * y).astype(o_ref.dtype)

    if tb <= 4:
        # Small batch tile: static unroll.
        for i in range(tb):
            compute_row(i)
    else:
        # Large batch tile: fori_loop bounds live ranges / trace size.
        def body(i, carry):
            compute_row(i)
            return carry
        jax.lax.fori_loop(0, tb, body, None)


def _vmem_capacity_bytes(default=64 * 1024 * 1024):
    try:
        info = pltpu.get_tpu_info()
        return int(getattr(info, "vmem_capacity_bytes", default))
    except Exception:
        return default


def _largest_divisor_at_most(n, cap):
    cap = max(1, min(cap, n))
    for d in range(cap, 0, -1):
        if n % d == 0:
            return d
    return 1


def adapter_block_pallas(x_nchw, weight, bias, *,
                         target_step_bytes=4 * 1024 * 1024,
                         max_tn=64 * 1024):
    """Forward of AdapterBlock: Conv2d(3, Cout, 1) + LeakyReLU(0.2).

    Args:
      x_nchw: (B, 3, H, W) float32
      weight: (Cout, 3) or (Cout, 3, 1, 1) float32
      bias:   (Cout,) float32
    Returns:
      (B, Cout, H, W) float32
    """
    B, Cin, H, W = x_nchw.shape
    if weight.ndim == 4:                       # (Cout, Cin, 1, 1) -> (Cout, Cin)
        weight = weight.reshape(weight.shape[0], weight.shape[1])
    Cout = weight.shape[0]
    assert weight.shape == (Cout, Cin)
    HW = H * W
    itemsize = 4                               # float32 I/O

    x = x_nchw.reshape(B, Cin, HW)             # contiguous reshape, no transpose
    b2d = bias.reshape(Cout, 1)

    # ---- generation-aware VMEM budget --------------------------------------
    vmem_cap = _vmem_capacity_bytes()
    # ~48 MiB on v7x (64 MiB/TC), up to 96 MiB on v5e/v6e (128 MiB), never below 32 MiB
    # (v5e's scoped default is only 16 MiB).
    vmem_limit = max(32 * 1024 * 1024,
                     min((vmem_cap * 3) // 4, 96 * 1024 * 1024))
    block_budget = (vmem_limit * 3) // 5       # headroom for Mosaic temporaries etc.

    # ---- lane (pixel) tile ---------------------------------------------------
    row_bytes = (Cin + Cout) * itemsize        # in+out HBM bytes per pixel per batch row
    temp_per_lane = 4 * Cout * itemsize        # headroom for FMA / LeakyReLU temporaries
    tn_vmem_cap = block_budget // (2 * row_bytes + temp_per_lane)   # double-buffered
    tn_cap = max(128, (min(max_tn, tn_vmem_cap) // 128) * 128)

    if HW % 128 == 0:
        tn = min(HW, tn_cap)
    elif HW <= tn_cap:
        tn = HW            # small odd-sized image: single full-width (full-dim) block
    else:
        tn = tn_cap        # lane-dense 128-multiple tiles; last pixel block is masked
    num_pt = pl.cdiv(HW, tn)

    # ---- batch tile (amortize per-step overhead when images are small) ------
    step_bytes_tb1 = row_bytes * tn
    desired_tb = max(1, -(-target_step_bytes // step_bytes_tb1))     # ceil div
    tb_vmem_cap = max(1, (block_budget - temp_per_lane * tn) // (2 * row_bytes * tn))
    tb = _largest_divisor_at_most(B, min(desired_tb, tb_vmem_cap))
    num_bt = B // tb

    # ---- grid: longer parallel axis first (megacore load balance on v7x) ----
    if num_pt >= num_bt:
        grid = (num_pt, num_bt)
        data_map = lambda p, b: (b, 0, p)      # block indices: (batch, channel, pixel)
    else:
        grid = (num_bt, num_pt)
        data_map = lambda b, p: (b, 0, p)
    const_map = lambda i, j: (0, 0)

    out = pl.pallas_call(
        _adapter_kernel,
        out_shape=jax.ShapeDtypeStruct((B, Cout, HW), jnp.float32),
        grid_spec=pltpu.PrefetchScalarGridSpec(
            num_scalar_prefetch=0,
            grid=grid,
            in_specs=[
                pl.BlockSpec((tb, Cin, tn), data_map),
                pl.BlockSpec((Cout, Cin), const_map),   # weight stays resident in VMEM
                pl.BlockSpec((Cout, 1), const_map),     # bias stays resident in VMEM
            ],
            out_specs=pl.BlockSpec((tb, Cout, tn), data_map),
        ),
        compiler_params=pltpu.CompilerParams(
            dimension_semantics=("parallel", "parallel"),
            vmem_limit_bytes=vmem_limit,
        ),
    )(x, weight, b2d)

    return out.reshape(B, Cout, H, W)


def init_params(key, output_channels, in_channels=3):
    """Deterministic init mimicking nn.Conv2d default (kaiming-uniform-ish bounds)."""
    k_w, k_b = jax.random.split(key)
    fan_in = in_channels * 1 * 1
    bound = 1.0 / (fan_in ** 0.5)
    weight = jax.random.uniform(
        k_w, (output_channels, in_channels), jnp.float32, -bound, bound)
    bias = jax.random.uniform(
        k_b, (output_channels,), jnp.float32, -bound, bound)
    return weight, bias


if __name__ == "__main__":
    key = jax.random.PRNGKey(0)

    def reference(x, w, b):
        y = jnp.einsum("bchw,oc->bohw", x, w) + b[None, :, None, None]
        return jnp.where(y > 0, y, 0.2 * y)

    # Each config exercises a different tiling path of the wrapper/kernel.
    configs = [
        dict(B=2,  Cout=8, H=16, W=16, kwargs={}),                        # small batch tile, static unroll
        dict(B=16, Cout=8, H=8,  W=8,  kwargs={}),                        # large batch tile, fori_loop path
        dict(B=2,  Cout=4, H=33, W=35, kwargs={}),                        # odd HW, full-width block, odd Cout
        dict(B=2,  Cout=4, H=33, W=35, kwargs=dict(max_tn=256)),          # masked tail pixel block
        dict(B=8,  Cout=8, H=16, W=16, kwargs=dict(target_step_bytes=1)), # batch-major grid ordering
    ]

    for i, cfg in enumerate(configs):
        k_x, k_p, key = jax.random.split(key, 3)
        B, Cout, H, W = cfg["B"], cfg["Cout"], cfg["H"], cfg["W"]

        x = jax.random.normal(k_x, (B, 3, H, W), jnp.float32)
        weight, bias = init_params(k_p, Cout, 3)

        fwd = jax.jit(functools.partial(adapter_block_pallas, **cfg["kwargs"]))
        out = fwd(x, weight, bias)
        jax.block_until_ready(out)

        ref = reference(x, weight, bias)
        assert out.shape == (B, Cout, H, W), (i, out.shape)
        assert jnp.allclose(out, ref, atol=1e-5, rtol=1e-5), f"mismatch in config {i}"

    print("KERNEL_OK")
</pallas_src>

<mosaic_0001>
module attributes {stable_mosaic.version = 11 : i64} {
  func.func @_adapter_kernel(%arg0: i32, %arg1: i32, %arg2: memref<2x3x256xf32, #tpu.memory_space<vmem>>, %arg3: memref<8x3xf32, #tpu.memory_space<vmem>>, %arg4: memref<8x1xf32, #tpu.memory_space<vmem>>, %arg5: memref<2x8x256xf32, #tpu.memory_space<vmem>>) attributes {dimension_semantics = [#tpu.dimension_semantics<parallel>, #tpu.dimension_semantics<parallel>], iteration_bounds = array<i64: 1, 1>, scalar_prefetch = 0 : i64, scratch_operands = 0 : i64, tpu.core_type = #tpu.core_type<tc>, window_params = [{transform_indices = @transform_0, window_bounds = array<i64: 2, 3, 256>}, {pipeline_mode = #tpu.pipeline_mode<synchronous>, transform_indices = @transform_1, window_bounds = array<i64: 8, 3>}, {pipeline_mode = #tpu.pipeline_mode<synchronous>, transform_indices = @transform_2, window_bounds = array<i64: 8, 1>}, {transform_indices = @transform_3, window_bounds = array<i64: 2, 8, 256>}]} {
    %c0 = arith.constant 0 : index
    %c0_0 = arith.constant 0 : index
    %0 = vector.load %arg3[%c0, %c0_0] : memref<8x3xf32, #tpu.memory_space<vmem>>, vector<8x3xf32>
    %c0_1 = arith.constant 0 : index
    %c0_2 = arith.constant 0 : index
    %1 = vector.load %arg4[%c0_1, %c0_2] : memref<8x1xf32, #tpu.memory_space<vmem>>, vector<8x1xf32>
    %c0_3 = arith.constant 0 : index
    %c0_4 = arith.constant 0 : index
    %c0_5 = arith.constant 0 : index
    %2 = vector.load %arg2[%c0_3, %c0_4, %c0_5] : memref<2x3x256xf32, #tpu.memory_space<vmem>>, vector<1x3x256xf32>
    %3 = vector.shape_cast %2 : vector<1x3x256xf32> to vector<3x256xf32>
    %4 = vector.extract_strided_slice %0 {offsets = [0, 0], sizes = [8, 1], strides = [1, 1]} : vector<8x3xf32> to vector<8x1xf32>
    %5 = vector.extract_strided_slice %3 {offsets = [0, 0], sizes = [1, 256], strides = [1, 1]} : vector<3x256xf32> to vector<1x256xf32>
    %6 = vector.broadcast %4 : vector<8x1xf32> to vector<8x256xf32>
    %7 = vector.broadcast %5 : vector<1x256xf32> to vector<8x256xf32>
    %8 = arith.mulf %6, %7 : vector<8x256xf32>
    %9 = vector.broadcast %1 : vector<8x1xf32> to vector<8x256xf32>
    %10 = arith.addf %9, %8 : vector<8x256xf32>
    %11 = vector.extract_strided_slice %0 {offsets = [0, 1], sizes = [8, 1], strides = [1, 1]} : vector<8x3xf32> to vector<8x1xf32>
    %12 = vector.extract_strided_slice %3 {offsets = [1, 0], sizes = [1, 256], strides = [1, 1]} : vector<3x256xf32> to vector<1x256xf32>
    %13 = vector.broadcast %11 : vector<8x1xf32> to vector<8x256xf32>
    %14 = vector.broadcast %12 : vector<1x256xf32> to vector<8x256xf32>
    %15 = arith.mulf %13, %14 : vector<8x256xf32>
    %16 = arith.addf %10, %15 : vector<8x256xf32>
    %17 = vector.extract_strided_slice %0 {offsets = [0, 2], sizes = [8, 1], strides = [1, 1]} : vector<8x3xf32> to vector<8x1xf32>
    %18 = vector.extract_strided_slice %3 {offsets = [2, 0], sizes = [1, 256], strides = [1, 1]} : vector<3x256xf32> to vector<1x256xf32>
    %19 = vector.broadcast %17 : vector<8x1xf32> to vector<8x256xf32>
    %20 = vector.broadcast %18 : vector<1x256xf32> to vector<8x256xf32>
    %21 = arith.mulf %19, %20 : vector<8x256xf32>
    %22 = arith.addf %16, %21 : vector<8x256xf32>
    %cst = arith.constant 0.000000e+00 : f32
    %23 = vector.broadcast %cst : f32 to vector<8x256xf32>
    %24 = arith.cmpf ogt, %22, %23 : vector<8x256xf32>
    %cst_6 = arith.constant 2.000000e-01 : f32
    %25 = vector.broadcast %cst_6 : f32 to vector<8x256xf32>
    %26 = arith.mulf %25, %22 : vector<8x256xf32>
    %27 = arith.select %24, %22, %26 : vector<8x256xi1>, vector<8x256xf32>
    %c0_7 = arith.constant 0 : index
    %c0_8 = arith.constant 0 : index
    %c0_9 = arith.constant 0 : index
    %28 = vector.load %arg5[%c0_7, %c0_8, %c0_9] : memref<2x8x256xf32, #tpu.memory_space<vmem>>, vector<1x8x256xf32>
    %29 = vector.shape_cast %28 : vector<1x8x256xf32> to vector<8x256xf32>
    %30 = vector.shape_cast %27 : vector<8x256xf32> to vector<1x8x256xf32>
    tpu.vector_store %arg5[%c0_7, %c0_8, %c0_9], %30 {strides = array<i32>} : memref<2x8x256xf32, #tpu.memory_space<vmem>>, vector<1x8x256xf32>,
    %c1 = arith.constant 1 : index
    %c0_10 = arith.constant 0 : index
    %c0_11 = arith.constant 0 : index
    %31 = vector.load %arg2[%c1, %c0_10, %c0_11] : memref<2x3x256xf32, #tpu.memory_space<vmem>>, vector<1x3x256xf32>
    %32 = vector.shape_cast %31 : vector<1x3x256xf32> to vector<3x256xf32>
    %33 = vector.extract_strided_slice %0 {offsets = [0, 0], sizes = [8, 1], strides = [1, 1]} : vector<8x3xf32> to vector<8x1xf32>
    %34 = vector.extract_strided_slice %32 {offsets = [0, 0], sizes = [1, 256], strides = [1, 1]} : vector<3x256xf32> to vector<1x256xf32>
    %35 = vector.broadcast %33 : vector<8x1xf32> to vector<8x256xf32>
    %36 = vector.broadcast %34 : vector<1x256xf32> to vector<8x256xf32>
    %37 = arith.mulf %35, %36 : vector<8x256xf32>
    %38 = vector.broadcast %1 : vector<8x1xf32> to vector<8x256xf32>
    %39 = arith.addf %38, %37 : vector<8x256xf32>
    %40 = vector.extract_strided_slice %0 {offsets = [0, 1], sizes = [8, 1], strides = [1, 1]} : vector<8x3xf32> to vector<8x1xf32>
    %41 = vector.extract_strided_slice %32 {offsets = [1, 0], sizes = [1, 256], strides = [1, 1]} : vector<3x256xf32> to vector<1x256xf32>
    %42 = vector.broadcast %40 : vector<8x1xf32> to vector<8x256xf32>
    %43 = vector.broadcast %41 : vector<1x256xf32> to vector<8x256xf32>
    %44 = arith.mulf %42, %43 : vector<8x256xf32>
    %45 = arith.addf %39, %44 : vector<8x256xf32>
    %46 = vector.extract_strided_slice %0 {offsets = [0, 2], sizes = [8, 1], strides = [1, 1]} : vector<8x3xf32> to vector<8x1xf32>
    %47 = vector.extract_strided_slice %32 {offsets = [2, 0], sizes = [1, 256], strides = [1, 1]} : vector<3x256xf32> to vector<1x256xf32>
    %48 = vector.broadcast %46 : vector<8x1xf32> to vector<8x256xf32>
    %49 = vector.broadcast %47 : vector<1x256xf32> to vector<8x256xf32>
    %50 = arith.mulf %48, %49 : vector<8x256xf32>
    %51 = arith.addf %45, %50 : vector<8x256xf32>
    %cst_12 = arith.constant 0.000000e+00 : f32
    %52 = vector.broadcast %cst_12 : f32 to vector<8x256xf32>
    %53 = arith.cmpf ogt, %51, %52 : vector<8x256xf32>
    %cst_13 = arith.constant 2.000000e-01 : f32
    %54 = vector.broadcast %cst_13 : f32 to vector<8x256xf32>
    %55 = arith.mulf %54, %51 : vector<8x256xf32>
    %56 = arith.select %53, %51, %55 : vector<8x256xi1>, vector<8x256xf32>
    %c1_14 = arith.constant 1 : index
    %c0_15 = arith.constant 0 : index
    %c0_16 = arith.constant 0 : index
    %57 = vector.load %arg5[%c1_14, %c0_15, %c0_16] : memref<2x8x256xf32, #tpu.memory_space<vmem>>, vector<1x8x256xf32>
    %58 = vector.shape_cast %57 : vector<1x8x256xf32> to vector<8x256xf32>
    %59 = vector.shape_cast %56 : vector<8x256xf32> to vector<1x8x256xf32>
    tpu.vector_store %arg5[%c1_14, %c0_15, %c0_16], %59 {strides = array<i32>} : memref<2x8x256xf32, #tpu.memory_space<vmem>>, vector<1x8x256xf32>,
    return
  }
  func.func @transform_0(%arg0: i32, %arg1: i32) -> (i32, i32, i32) {
    %c0_i32 = arith.constant 0 : i32
    %c0_i32_0 = arith.constant 0 : i32
    return %arg1, %c0_i32, %arg0 : i32, i32, i32
  }
  func.func @transform_1(%arg0: i32, %arg1: i32) -> (i32, i32) {
    %c0_i32 = arith.constant 0 : i32
    %c0_i32_0 = arith.constant 0 : i32
    %c0_i32_1 = arith.constant 0 : i32
    return %c0_i32, %c0_i32_0 : i32, i32
  }
  func.func @transform_2(%arg0: i32, %arg1: i32) -> (i32, i32) {
    %c0_i32 = arith.constant 0 : i32
    %c0_i32_0 = arith.constant 0 : i32
    %c0_i32_1 = arith.constant 0 : i32
    return %c0_i32, %c0_i32_0 : i32, i32
  }
  func.func @transform_3(%arg0: i32, %arg1: i32) -> (i32, i32, i32) {
    %c0_i32 = arith.constant 0 : i32
    %c0_i32_0 = arith.constant 0 : i32
    return %arg1, %c0_i32, %arg0 : i32, i32, i32
  }
}

</mosaic_0001>

<bundles_post_ra>
// kernel: adapter_block_pallas.1
= control target key start
LH: loop header
LB: loop body
LE: loop exit
PB: predicated region body
PF: predicated region fallthrough
CT: control target
= control target key end

     0   :  { %v202_v0 = vmov 0   ;;  %v203_v1 = vmov 1   ;;  %v204_v4 = vmov 2   ;;  %v23_v5 = vlaneseq  ;;  %s249_s1 = inlined_call_operand.vmem [shape: f32[8,3], index: 1, kind: input, shape index: {}]   ;;  %s250_s2 = inlined_call_operand.vmem [shape: f32[8,1], index: 2, kind: input, shape index: {}]   ;;  %s251_s0 = inlined_call_operand.vmem [shape: f32[2,3,256], index: 0, kind: input, shape index: {}]   ;;  %s252_s3 = inlined_call_operand.vmem [shape: f32[2,8,256], index: 3, kind: output, shape index: {}]  }
   0x1   :  { %198 = vset.pattern.permute.xlu0 %v202_v0  ;;  %199 = vset.pattern.permute.xlu1 %v203_v1  ;;  %v14_v2 = vld [vmem:[%s249_s1] sm:$0xff]  ;;  %v192_v12 = vld [vmem:[%s251_s0 + $0x8] sm:$0x77] }
   0x2   :  { %19 = vperm.xlu0 %198, %v14_v2   ;;  %51 = vperm.xlu1 %199, %v14_v2   ;;  %v15_v3 = vld [vmem:[%s250_s2] sm:$0xff]  ;;  %v24_v6 = vshrl.u32 %v23_v5, 7 }
   0x3   :  { %v16_v11 = vld [vmem:[%s251_s0] sm:$0x77] }
   0x4   :  { %v25_v7 = vsub.s32 0, %v24_v6  ;;  %v29_v8 = vsub.s32 4, %v24_v6  ;;  %v56_v9 = vsub.s32 1, %v24_v6  ;;  %v60_v10 = vsub.s32 5, %v24_v6 }
   0x5   :  { %v82_v13 = vsub.s32 2, %v24_v6  ;;  %v86_v14 = vsub.s32 6, %v24_v6 }
   0x6   :  { %45 = vperm.xlu0 %198, %v15_v3   ;;  %200 = vset.pattern.permute.xlu1 %v204_v4  ;;  %v26_v15 = vrot.slane %v16_v11, %v25_v7  ;;  %v30_v16 = vrot.slane %v16_v11, %v29_v8  ;;  %v116_v17 = vrot.slane %v192_v12, %v25_v7 }
   0x7   :  { %77 = vperm.xlu1 %200, %v14_v2   ;;  %v120_v18 = vrot.slane %v192_v12, %v29_v8  ;;  %v57_v19 = vrot.slane %v16_v11, %v56_v9  ;;  %v61_v20 = vrot.slane %v16_v11, %v60_v10  ;;  %v138_v21 = vrot.slane %v192_v12, %v56_v9 }
   0x8   :  { %v142_v22 = vrot.slane %v192_v12, %v60_v10  ;;  %v83_v23 = vrot.slane %v16_v11, %v82_v13  ;;  %v87_v24 = vrot.slane %v16_v11, %v86_v14  ;;  %v160_v25 = vrot.slane %v192_v12, %v82_v13 }
   0x9   :  { %v164_v26 = vrot.slane %v192_v12, %v86_v14  ;;  %v36_v27 = vrot.slane %v26_v15, %v25_v7  ;;  %v40_v28 = vrot.slane %v30_v16, %v25_v7  ;;  %v126_v29 = vrot.slane %v116_v17, %v25_v7 }
   0xa   :  { %201 = vset.pattern.permute.xlu0 %v204_v4  ;;  %v130_v30 = vrot.slane %v120_v18, %v25_v7  ;;  %v67_v33 = vrot.slane %v57_v19, %v56_v9  ;;  %v71_v34 = vrot.slane %v61_v20, %v56_v9  ;;  %v148_v35 = vrot.slane %v138_v21, %v56_v9 }
   0xb   :  { %v152_v36 = vrot.slane %v142_v22, %v56_v9  ;;  %v93_v37 = vrot.slane %v83_v23, %v82_v13  ;;  %v97_v38 = vrot.slane %v87_v24, %v82_v13  ;;  %v170_v39 = vrot.slane %v160_v25, %v82_v13 }
   0xc   :  { %v174_v40 = vrot.slane %v164_v26, %v82_v13 }
  0x81   :  { %v20_v31 = vpop.permute.xlu0 %19  ;;  %v52_v32 = vpop.permute.xlu1 %51 }
  0x82   :  { %v41_v41 = vmul.f32 %v36_v27, %v20_v31  ;;  %v42_v42 = vmul.f32 %v40_v28, %v20_v31  ;;  %v131_v43 = vmul.f32 %v126_v29, %v20_v31  ;;  %v132_v44 = vmul.f32 %v130_v30, %v20_v31 }
  0x83   :  { %v72_v45 = vmul.f32 %v67_v33, %v52_v32  ;;  %v73_v46 = vmul.f32 %v71_v34, %v52_v32  ;;  %v153_v47 = vmul.f32 %v148_v35, %v52_v32  ;;  %v154_v48 = vmul.f32 %v152_v36, %v52_v32 }
  0x85   :  { %v46_v49 = vpop.permute.xlu0 %45 }
  0x86   :  { %v48_v50 = vadd.f32 %v46_v49, %v41_v41  ;;  %v49_v51 = vadd.f32 %v46_v49, %v42_v42  ;;  %v133_v52 = vadd.f32 %v131_v43, %v46_v49  ;;  %v134_v53 = vadd.f32 %v132_v44, %v46_v49  ;;  %v78_v54 = vpop.permute.xlu1 %77 }
  0x87   :  { %v98_v55 = vmul.f32 %v93_v37, %v78_v54  ;;  %v99_v56 = vmul.f32 %v97_v38, %v78_v54  ;;  %v175_v57 = vmul.f32 %v170_v39, %v78_v54  ;;  %v176_v58 = vmul.f32 %v174_v40, %v78_v54 }
  0x88   :  { %v74_v59 = vadd.f32 %v72_v45, %v48_v50  ;;  %v75_v60 = vadd.f32 %v73_v46, %v49_v51  ;;  %v155_v61 = vadd.f32 %v153_v47, %v133_v52  ;;  %v156_v62 = vadd.f32 %v154_v48, %v134_v53 }
  0x8a   :  { %v100_v63 = vadd.f32 %v98_v55, %v74_v59  ;;  %v101_v0 = vadd.f32 %v99_v56, %v75_v60  ;;  %v177_v1 = vadd.f32 %v175_v57, %v155_v61  ;;  %v178_v2 = vadd.f32 %v176_v58, %v156_v62 }
  0x8c   :  { %vm102_vm0 = vcmp.gt.f32.partialorder %v100_v63, 0.0  ;;  %vm103_vm1 = vcmp.gt.f32.partialorder %v101_v0, 0.0  ;;  %v104_v3 = vmul.f32 0.2, %v100_v63  ;;  %v105_v4 = vmul.f32 0.2, %v101_v0 }
  0x8d   :  { %vm179_vm2 = vcmp.gt.f32.partialorder %v177_v1, 0.0  ;;  %vm180_vm3 = vcmp.gt.f32.partialorder %v178_v2, 0.0  ;;  %v181_v5 = vmul.f32 0.2, %v177_v1  ;;  %v182_v6 = vmul.f32 0.2, %v178_v2 }
  0x8e   :  { %v106_v7 = vsel %vm102_vm0, %v100_v63, %v104_v3  ;;  %v107_v8 = vsel %vm103_vm1, %v101_v0, %v105_v4 }
  0x8f   :  { %108 = vst [vmem:[%s252_s3] sm:$0xff] %v106_v7  ;;  %109 = vst [vmem:[%s252_s3 + $0x8] sm:$0xff] %v107_v8  ;;  %v183_v9 = vsel %vm179_vm2, %v177_v1, %v181_v5  ;;  %v184_v10 = vsel %vm180_vm3, %v178_v2, %v182_v6 }
  0x90   :  { %193 = vst [vmem:[%s252_s3 + $0x10] sm:$0xff] %v183_v9  ;;  %194 = vst [vmem:[%s252_s3 + $0x18] sm:$0xff] %v184_v10 }

</bundles_post_ra>
